<compile_context>
chip_gen: v7x
topology: tpu7x:2x2x1
jax: 0.10.0
libtpu: 0.0.40
codegen_flags: <defaults>
</compile_context>

<pallas_src>
import functools

import jax
import jax.numpy as jnp
from jax import lax
from jax.experimental import pallas as pl
from jax.experimental.pallas import tpu as pltpu

LANE = 128
SUBLANE = 8
MAX_UNROLL = 8
# Keep the whole weight stack VMEM-resident only while it is comfortably small
# (the pipeline double-buffers it, so budget ~2x this figure of VMEM).
RESIDENT_WEIGHT_BYTES = 4 * 1024 * 1024


def _round_up(v, m):
    return (v + m - 1) // m * m


def _pick_row_tile(batch, max_block_rows=512):
    """Row tile: multiple of 8, <= max_block_rows, derived from B (no blind
    round-up padding), and splitting the batch into >=2 tiles when possible so
    the 'parallel' grid axis can occupy both v7x TensorCores."""
    bp0 = _round_up(batch, SUBLANE)
    if bp0 > SUBLANE:
        tiles = max(2, pl.cdiv(bp0, max_block_rows))
    else:
        tiles = 1
    tb = min(_round_up(pl.cdiv(bp0, tiles), SUBLANE), max_block_rows)
    bp = _round_up(bp0, tb)
    return tb, bp


# ---------------------------------------------------------------------------
# Kernels
# ---------------------------------------------------------------------------
def _resident_kernel(x_ref, w_ref, b_ref, o_ref, *, n_iters, unroll):
    # x_ref: (TB, Fp)  w_ref: (n_iters, Fp, Fp)  b_ref: (n_iters, 1, Fp)
    # Whole weight stack is VMEM-resident; the repeat is already folded in, so
    # each step is one (TB,Fp)x(Fp,Fp) MXU matmul + VPU bias/skip adds.
    x = x_ref[...]

    def body(i, cur):
        z = jnp.dot(cur, w_ref[i], preferred_element_type=jnp.float32)
        return x + (z + b_ref[i])            # skip connection: inputs = x + z

    out = lax.fori_loop(0, n_iters, body, x, unroll=unroll)
    o_ref[...] = out.astype(o_ref.dtype)


def _stream_kernel(x_ref, w_ref, b_ref, o_ref, carry_ref):
    # Grid: (batch tile "parallel", layer "arbitrary").  One layer's weights are
    # streamed per grid step; the recurrence carry lives in VMEM scratch.
    layer = pl.program_id(1)

    @pl.when(layer == 0)
    def _():
        carry_ref[...] = x_ref[...]

    z = jnp.dot(carry_ref[...], w_ref[0], preferred_element_type=jnp.float32)
    new = x_ref[...] + (z + b_ref[0])        # skip connection: inputs = x + z
    carry_ref[...] = new

    @pl.when(layer == pl.num_programs(1) - 1)
    def _():
        o_ref[...] = new.astype(o_ref.dtype)


# ---------------------------------------------------------------------------
# One-time parameter preparation (hoisted out of the per-forward path)
# ---------------------------------------------------------------------------
def fold_and_pad_params(weights, biases, in_features):
    """Fold `inputs.repeat(1, F)` exactly into the per-layer weights and pad to
    lane-dense (Fp, Fp) tiles.  Weights are static across forwards: call this
    ONCE at module init and reuse the result for every forward call.

    weights: (L, F, F*F) float32   (PyTorch Linear layout: (out, in))
    biases:  (L, F)      float32
    """
    F = int(in_features)
    n_iters = F                              # num_neurons == in_features
    L = weights.shape[0]
    assert L >= F, "SkipMLN indexes neuron_layers[i] for i in range(in_features)"

    #   repeat(inputs) @ W^T == inputs @ (sum_r W[:, r*F:(r+1)*F])^T   (exact)
    w_blocks = weights[:n_iters].reshape(n_iters, F, F, F)   # (L_used, out, rep, in)
    w_eff = jnp.sum(w_blocks, axis=2)                        # (L_used, out, in)
    w_k = jnp.transpose(w_eff, (0, 2, 1))                    # (L_used, in, out)

    Fp = max(LANE, _round_up(F, LANE))
    w_p = jnp.zeros((n_iters, Fp, Fp), jnp.float32).at[:, :F, :F].set(
        w_k.astype(jnp.float32))
    b_p = jnp.zeros((n_iters, 1, Fp), jnp.float32).at[:, 0, :F].set(
        biases[:n_iters].astype(jnp.float32))
    return w_p, b_p


# ---------------------------------------------------------------------------
# Forward
# ---------------------------------------------------------------------------
def skip_mln_forward(x, w_p, b_p, *, max_block_rows=512, mode="auto"):
    """x: (B, F) float32;  w_p/b_p: output of fold_and_pad_params()."""
    B, F = x.shape
    n_iters, Fp, _ = w_p.shape

    TB, Bp = _pick_row_tile(B, max_block_rows)
    x_p = jnp.zeros((Bp, Fp), jnp.float32).at[:B, :F].set(x.astype(jnp.float32))

    if mode == "auto":
        mode = ("resident"
                if n_iters * Fp * Fp * 4 <= RESIDENT_WEIGHT_BYTES else "stream")

    cost = pl.CostEstimate(
        flops=2 * Bp * Fp * Fp * n_iters,
        transcendentals=0,
        bytes_accessed=4 * (2 * Bp * Fp + n_iters * Fp * Fp + n_iters * Fp),
    )

    if mode == "resident":
        out = pl.pallas_call(
            functools.partial(_resident_kernel, n_iters=n_iters,
                              unroll=min(n_iters, MAX_UNROLL)),
            out_shape=jax.ShapeDtypeStruct((Bp, Fp), jnp.float32),
            grid_spec=pltpu.PrefetchScalarGridSpec(
                num_scalar_prefetch=0,
                grid=(Bp // TB,),
                in_specs=[
                    pl.BlockSpec((TB, Fp), lambda m: (m, 0)),
                    pl.BlockSpec((n_iters, Fp, Fp), lambda m: (0, 0, 0)),
                    pl.BlockSpec((n_iters, 1, Fp), lambda m: (0, 0, 0)),
                ],
                out_specs=pl.BlockSpec((TB, Fp), lambda m: (m, 0)),
            ),
            compiler_params=pltpu.CompilerParams(
                dimension_semantics=("parallel",),
                vmem_limit_bytes=32 * 1024 * 1024,
            ),
            cost_estimate=cost,
        )(x_p, w_p, b_p)
    else:
        out = pl.pallas_call(
            _stream_kernel,
            out_shape=jax.ShapeDtypeStruct((Bp, Fp), jnp.float32),
            grid_spec=pltpu.PrefetchScalarGridSpec(
                num_scalar_prefetch=0,
                grid=(Bp // TB, n_iters),
                in_specs=[
                    pl.BlockSpec((TB, Fp), lambda m, l: (m, 0)),
                    pl.BlockSpec((1, Fp, Fp), lambda m, l: (l, 0, 0)),
                    pl.BlockSpec((1, 1, Fp), lambda m, l: (l, 0, 0)),
                ],
                out_specs=pl.BlockSpec((TB, Fp), lambda m, l: (m, 0)),
                scratch_shapes=[pltpu.VMEM((TB, Fp), jnp.float32)],
            ),
            compiler_params=pltpu.CompilerParams(
                dimension_semantics=("parallel", "arbitrary"),
                vmem_limit_bytes=32 * 1024 * 1024,
            ),
            cost_estimate=cost,
        )(x_p, w_p, b_p)

    return out[:B, :F]


# ---------------------------------------------------------------------------
# Demo / correctness check
# ---------------------------------------------------------------------------
if __name__ == "__main__":
    key = jax.random.PRNGKey(0)
    k_x, k_w, k_b = jax.random.split(key, 3)

    in_features = 8      # F; num_neurons == in_features
    num_layers = 8       # must be >= in_features for the original forward
    batch = 12           # pads to 16 rows -> 2 batch tiles, exercises the grid

    F = in_features
    x = jax.random.normal(k_x, (batch, F), jnp.float32)
    # PyTorch-Linear-layout params for the DendriticLayer stand-in: (out, in=F*F)
    weights = 0.05 * jax.random.normal(k_w, (num_layers, F, F * F), jnp.float32)
    biases = 0.05 * jax.random.normal(k_b, (num_layers, F), jnp.float32)

    # Fold the repeat into the weights ONCE (hoisted out of the forward path).
    w_p, b_p = fold_and_pad_params(weights, biases, in_features)
    jax.block_until_ready((w_p, b_p))

    # Pure-JAX reference that materializes the repeat, mirroring the PyTorch code.
    def ref_forward(x, weights, biases):
        inputs = x
        for i in range(F):
            rep = jnp.tile(inputs, (1, F))          # inputs.repeat(1, num_neurons)
            z = rep @ weights[i].T + biases[i]      # DendriticLayer stand-in
            inputs = x + z
        return inputs

    ref = ref_forward(x, weights, biases)

    # Exercise both code paths (weight-resident fused loop AND layer streaming).
    for mode in ("resident", "stream"):
        out = skip_mln_forward(x, w_p, b_p, mode=mode)
        jax.block_until_ready(out)
        assert out.shape == (batch, F), (mode, out.shape)
        err = float(jnp.max(jnp.abs(out - ref)))
        assert jnp.allclose(out, ref, atol=1e-4, rtol=1e-4), (mode, err)

    print("KERNEL_OK")
</pallas_src>

<mosaic_0001>
module attributes {stable_mosaic.version = 11 : i64} {
  func.func @_resident_kernel(%arg0: i32, %arg1: memref<8x128xf32, #tpu.memory_space<vmem>>, %arg2: memref<8x128x128xf32, #tpu.memory_space<vmem>>, %arg3: memref<8x1x128xf32, #tpu.memory_space<vmem>>, %arg4: memref<8x128xf32, #tpu.memory_space<vmem>>) attributes {dimension_semantics = [#tpu.dimension_semantics<parallel>], iteration_bounds = array<i64: 2>, scalar_prefetch = 0 : i64, scratch_operands = 0 : i64, tpu.core_type = #tpu.core_type<tc>, window_params = [{transform_indices = @transform_0, window_bounds = array<i64: 8, 128>}, {pipeline_mode = #tpu.pipeline_mode<synchronous>, transform_indices = @transform_1, window_bounds = array<i64: 8, 128, 128>}, {pipeline_mode = #tpu.pipeline_mode<synchronous>, transform_indices = @transform_2, window_bounds = array<i64: 8, 1, 128>}, {transform_indices = @transform_3, window_bounds = array<i64: 8, 128>}]} {
    %c0 = arith.constant 0 : index
    %c0_0 = arith.constant 0 : index
    %0 = vector.load %arg1[%c0, %c0_0] : memref<8x128xf32, #tpu.memory_space<vmem>>, vector<8x128xf32>
    %c0_i32 = arith.constant 0 : i32
    %1 = arith.index_cast %c0_i32 : i32 to index
    %c0_1 = arith.constant 0 : index
    %c0_2 = arith.constant 0 : index
    %2 = vector.load %arg2[%1, %c0_1, %c0_2] : memref<8x128x128xf32, #tpu.memory_space<vmem>>, vector<1x128x128xf32>
    %3 = vector.shape_cast %2 : vector<1x128x128xf32> to vector<128x128xf32>
    %cst = arith.constant dense<0.000000e+00> : vector<8x128xf32>
    %4 = tpu.matmul %0, %3, %cst {dimension_numbers = #tpu.dot_dimension_numbers<[1], [0], [0], [1], [0, 0, 1, 1], [], []>} : vector<8x128xf32>, vector<128x128xf32>, vector<8x128xf32> -> vector<8x128xf32>
    %5 = arith.index_cast %c0_i32 : i32 to index
    %c0_3 = arith.constant 0 : index
    %c0_4 = arith.constant 0 : index
    %6 = vector.load %arg3[%5, %c0_3, %c0_4] : memref<8x1x128xf32, #tpu.memory_space<vmem>>, vector<1x1x128xf32>
    %7 = vector.shape_cast %6 : vector<1x1x128xf32> to vector<1x128xf32>
    %8 = vector.broadcast %7 : vector<1x128xf32> to vector<8x128xf32>
    %9 = arith.addf %4, %8 : vector<8x128xf32>
    %10 = arith.addf %0, %9 : vector<8x128xf32>
    %c1_i32 = arith.constant 1 : i32
    %11 = arith.index_cast %c1_i32 : i32 to index
    %c0_5 = arith.constant 0 : index
    %c0_6 = arith.constant 0 : index
    %12 = vector.load %arg2[%11, %c0_5, %c0_6] : memref<8x128x128xf32, #tpu.memory_space<vmem>>, vector<1x128x128xf32>
    %13 = vector.shape_cast %12 : vector<1x128x128xf32> to vector<128x128xf32>
    %cst_7 = arith.constant dense<0.000000e+00> : vector<8x128xf32>
    %14 = tpu.matmul %10, %13, %cst_7 {dimension_numbers = #tpu.dot_dimension_numbers<[1], [0], [0], [1], [0, 0, 1, 1], [], []>} : vector<8x128xf32>, vector<128x128xf32>, vector<8x128xf32> -> vector<8x128xf32>
    %15 = arith.index_cast %c1_i32 : i32 to index
    %c0_8 = arith.constant 0 : index
    %c0_9 = arith.constant 0 : index
    %16 = vector.load %arg3[%15, %c0_8, %c0_9] : memref<8x1x128xf32, #tpu.memory_space<vmem>>, vector<1x1x128xf32>
    %17 = vector.shape_cast %16 : vector<1x1x128xf32> to vector<1x128xf32>
    %18 = vector.broadcast %17 : vector<1x128xf32> to vector<8x128xf32>
    %19 = arith.addf %14, %18 : vector<8x128xf32>
    %20 = arith.addf %0, %19 : vector<8x128xf32>
    %c2_i32 = arith.constant 2 : i32
    %21 = arith.index_cast %c2_i32 : i32 to index
    %c0_10 = arith.constant 0 : index
    %c0_11 = arith.constant 0 : index
    %22 = vector.load %arg2[%21, %c0_10, %c0_11] : memref<8x128x128xf32, #tpu.memory_space<vmem>>, vector<1x128x128xf32>
    %23 = vector.shape_cast %22 : vector<1x128x128xf32> to vector<128x128xf32>
    %cst_12 = arith.constant dense<0.000000e+00> : vector<8x128xf32>
    %24 = tpu.matmul %20, %23, %cst_12 {dimension_numbers = #tpu.dot_dimension_numbers<[1], [0], [0], [1], [0, 0, 1, 1], [], []>} : vector<8x128xf32>, vector<128x128xf32>, vector<8x128xf32> -> vector<8x128xf32>
    %25 = arith.index_cast %c2_i32 : i32 to index
    %c0_13 = arith.constant 0 : index
    %c0_14 = arith.constant 0 : index
    %26 = vector.load %arg3[%25, %c0_13, %c0_14] : memref<8x1x128xf32, #tpu.memory_space<vmem>>, vector<1x1x128xf32>
    %27 = vector.shape_cast %26 : vector<1x1x128xf32> to vector<1x128xf32>
    %28 = vector.broadcast %27 : vector<1x128xf32> to vector<8x128xf32>
    %29 = arith.addf %24, %28 : vector<8x128xf32>
    %30 = arith.addf %0, %29 : vector<8x128xf32>
    %c3_i32 = arith.constant 3 : i32
    %31 = arith.index_cast %c3_i32 : i32 to index
    %c0_15 = arith.constant 0 : index
    %c0_16 = arith.constant 0 : index
    %32 = vector.load %arg2[%31, %c0_15, %c0_16] : memref<8x128x128xf32, #tpu.memory_space<vmem>>, vector<1x128x128xf32>
    %33 = vector.shape_cast %32 : vector<1x128x128xf32> to vector<128x128xf32>
    %cst_17 = arith.constant dense<0.000000e+00> : vector<8x128xf32>
    %34 = tpu.matmul %30, %33, %cst_17 {dimension_numbers = #tpu.dot_dimension_numbers<[1], [0], [0], [1], [0, 0, 1, 1], [], []>} : vector<8x128xf32>, vector<128x128xf32>, vector<8x128xf32> -> vector<8x128xf32>
    %35 = arith.index_cast %c3_i32 : i32 to index
    %c0_18 = arith.constant 0 : index
    %c0_19 = arith.constant 0 : index
    %36 = vector.load %arg3[%35, %c0_18, %c0_19] : memref<8x1x128xf32, #tpu.memory_space<vmem>>, vector<1x1x128xf32>
    %37 = vector.shape_cast %36 : vector<1x1x128xf32> to vector<1x128xf32>
    %38 = vector.broadcast %37 : vector<1x128xf32> to vector<8x128xf32>
    %39 = arith.addf %34, %38 : vector<8x128xf32>
    %40 = arith.addf %0, %39 : vector<8x128xf32>
    %c4_i32 = arith.constant 4 : i32
    %41 = arith.index_cast %c4_i32 : i32 to index
    %c0_20 = arith.constant 0 : index
    %c0_21 = arith.constant 0 : index
    %42 = vector.load %arg2[%41, %c0_20, %c0_21] : memref<8x128x128xf32, #tpu.memory_space<vmem>>, vector<1x128x128xf32>
    %43 = vector.shape_cast %42 : vector<1x128x128xf32> to vector<128x128xf32>
    %cst_22 = arith.constant dense<0.000000e+00> : vector<8x128xf32>
    %44 = tpu.matmul %40, %43, %cst_22 {dimension_numbers = #tpu.dot_dimension_numbers<[1], [0], [0], [1], [0, 0, 1, 1], [], []>} : vector<8x128xf32>, vector<128x128xf32>, vector<8x128xf32> -> vector<8x128xf32>
    %45 = arith.index_cast %c4_i32 : i32 to index
    %c0_23 = arith.constant 0 : index
    %c0_24 = arith.constant 0 : index
    %46 = vector.load %arg3[%45, %c0_23, %c0_24] : memref<8x1x128xf32, #tpu.memory_space<vmem>>, vector<1x1x128xf32>
    %47 = vector.shape_cast %46 : vector<1x1x128xf32> to vector<1x128xf32>
    %48 = vector.broadcast %47 : vector<1x128xf32> to vector<8x128xf32>
    %49 = arith.addf %44, %48 : vector<8x128xf32>
    %50 = arith.addf %0, %49 : vector<8x128xf32>
    %c5_i32 = arith.constant 5 : i32
    %51 = arith.index_cast %c5_i32 : i32 to index
    %c0_25 = arith.constant 0 : index
    %c0_26 = arith.constant 0 : index
    %52 = vector.load %arg2[%51, %c0_25, %c0_26] : memref<8x128x128xf32, #tpu.memory_space<vmem>>, vector<1x128x128xf32>
    %53 = vector.shape_cast %52 : vector<1x128x128xf32> to vector<128x128xf32>
    %cst_27 = arith.constant dense<0.000000e+00> : vector<8x128xf32>
    %54 = tpu.matmul %50, %53, %cst_27 {dimension_numbers = #tpu.dot_dimension_numbers<[1], [0], [0], [1], [0, 0, 1, 1], [], []>} : vector<8x128xf32>, vector<128x128xf32>, vector<8x128xf32> -> vector<8x128xf32>
    %55 = arith.index_cast %c5_i32 : i32 to index
    %c0_28 = arith.constant 0 : index
    %c0_29 = arith.constant 0 : index
    %56 = vector.load %arg3[%55, %c0_28, %c0_29] : memref<8x1x128xf32, #tpu.memory_space<vmem>>, vector<1x1x128xf32>
    %57 = vector.shape_cast %56 : vector<1x1x128xf32> to vector<1x128xf32>
    %58 = vector.broadcast %57 : vector<1x128xf32> to vector<8x128xf32>
    %59 = arith.addf %54, %58 : vector<8x128xf32>
    %60 = arith.addf %0, %59 : vector<8x128xf32>
    %c6_i32 = arith.constant 6 : i32
    %61 = arith.index_cast %c6_i32 : i32 to index
    %c0_30 = arith.constant 0 : index
    %c0_31 = arith.constant 0 : index
    %62 = vector.load %arg2[%61, %c0_30, %c0_31] : memref<8x128x128xf32, #tpu.memory_space<vmem>>, vector<1x128x128xf32>
    %63 = vector.shape_cast %62 : vector<1x128x128xf32> to vector<128x128xf32>
    %cst_32 = arith.constant dense<0.000000e+00> : vector<8x128xf32>
    %64 = tpu.matmul %60, %63, %cst_32 {dimension_numbers = #tpu.dot_dimension_numbers<[1], [0], [0], [1], [0, 0, 1, 1], [], []>} : vector<8x128xf32>, vector<128x128xf32>, vector<8x128xf32> -> vector<8x128xf32>
    %65 = arith.index_cast %c6_i32 : i32 to index
    %c0_33 = arith.constant 0 : index
    %c0_34 = arith.constant 0 : index
    %66 = vector.load %arg3[%65, %c0_33, %c0_34] : memref<8x1x128xf32, #tpu.memory_space<vmem>>, vector<1x1x128xf32>
    %67 = vector.shape_cast %66 : vector<1x1x128xf32> to vector<1x128xf32>
    %68 = vector.broadcast %67 : vector<1x128xf32> to vector<8x128xf32>
    %69 = arith.addf %64, %68 : vector<8x128xf32>
    %70 = arith.addf %0, %69 : vector<8x128xf32>
    %c7_i32 = arith.constant 7 : i32
    %71 = arith.index_cast %c7_i32 : i32 to index
    %c0_35 = arith.constant 0 : index
    %c0_36 = arith.constant 0 : index
    %72 = vector.load %arg2[%71, %c0_35, %c0_36] : memref<8x128x128xf32, #tpu.memory_space<vmem>>, vector<1x128x128xf32>
    %73 = vector.shape_cast %72 : vector<1x128x128xf32> to vector<128x128xf32>
    %cst_37 = arith.constant dense<0.000000e+00> : vector<8x128xf32>
    %74 = tpu.matmul %70, %73, %cst_37 {dimension_numbers = #tpu.dot_dimension_numbers<[1], [0], [0], [1], [0, 0, 1, 1], [], []>} : vector<8x128xf32>, vector<128x128xf32>, vector<8x128xf32> -> vector<8x128xf32>
    %75 = arith.index_cast %c7_i32 : i32 to index
    %c0_38 = arith.constant 0 : index
    %c0_39 = arith.constant 0 : index
    %76 = vector.load %arg3[%75, %c0_38, %c0_39] : memref<8x1x128xf32, #tpu.memory_space<vmem>>, vector<1x1x128xf32>
    %77 = vector.shape_cast %76 : vector<1x1x128xf32> to vector<1x128xf32>
    %78 = vector.broadcast %77 : vector<1x128xf32> to vector<8x128xf32>
    %79 = arith.addf %74, %78 : vector<8x128xf32>
    %80 = arith.addf %0, %79 : vector<8x128xf32>
    %c8_i32 = arith.constant 8 : i32
    %c0_40 = arith.constant 0 : index
    %c0_41 = arith.constant 0 : index
    %81 = vector.load %arg4[%c0_40, %c0_41] : memref<8x128xf32, #tpu.memory_space<vmem>>, vector<8x128xf32>
    tpu.vector_store %arg4[%c0_40, %c0_41], %80 {strides = array<i32>} : memref<8x128xf32, #tpu.memory_space<vmem>>, vector<8x128xf32>,
    return
  }
  func.func @transform_0(%arg0: i32) -> (i32, i32) {
    %c0_i32 = arith.constant 0 : i32
    %c0_i32_0 = arith.constant 0 : i32
    return %arg0, %c0_i32 : i32, i32
  }
  func.func @transform_1(%arg0: i32) -> (i32, i32, i32) {
    %c0_i32 = arith.constant 0 : i32
    %c0_i32_0 = arith.constant 0 : i32
    %c0_i32_1 = arith.constant 0 : i32
    %c0_i32_2 = arith.constant 0 : i32
    return %c0_i32, %c0_i32_0, %c0_i32_1 : i32, i32, i32
  }
  func.func @transform_2(%arg0: i32) -> (i32, i32, i32) {
    %c0_i32 = arith.constant 0 : i32
    %c0_i32_0 = arith.constant 0 : i32
    %c0_i32_1 = arith.constant 0 : i32
    %c0_i32_2 = arith.constant 0 : i32
    return %c0_i32, %c0_i32_0, %c0_i32_1 : i32, i32, i32
  }
  func.func @transform_3(%arg0: i32) -> (i32, i32) {
    %c0_i32 = arith.constant 0 : i32
    %c0_i32_0 = arith.constant 0 : i32
    return %arg0, %c0_i32 : i32, i32
  }
}

</mosaic_0001>

<bundles_post_ra>
// kernel: tpu_custom_call.1
= control target key start
LH: loop header
LB: loop body
LE: loop exit
PB: predicated region body
PF: predicated region fallthrough
CT: control target
= control target key end

     0   :  { %8 = vsyncpa [#allocation3], 0  ;;  %s2308_s0 = inlined_call_operand.hbm [shape: f32[16,128], index: 0, kind: input, shape index: {}]   ;;  %s2309_s1 = inlined_call_operand.hbm [shape: f32[8,128,128], index: 1, kind: input, shape index: {}]   ;;  %s2310_s2 = inlined_call_operand.hbm [shape: f32[8,1,128], index: 2, kind: input, shape index: {}]   ;;  %s2311_s3 = inlined_call_operand.hbm [shape: f32[16,128], index: 3, kind: output, shape index: {}]  }
   0x1   :  { %10 = vsyncpa [#allocation3 + $0x1], 0 }
   0x2   :  { %11 = vsyncpa [#allocation6], 0 }
   0x3   :  { %12 = vsyncpa [#allocation4], 0 }
   0x4   :  { %14 = vsyncpa [#allocation4 + $0x1], 0  ;;  %s1981_s12 = smov 0   ;;  %s1983_s13 = smov 0  }
   0x5   :  { %s1985_s14 = smov 0   ;;  %s1987_s15 = smov 0  }
   0x6 LB: > { %s2002_s16 = sadd.s32 4294967295, %s1948_s15   ;;  %s1086_s17 = sadd.s32 4294967294, %s1948_s15   ;;  %s1948_s15 = sphi %s1987_s15, %s2331_s15   ;;  %s1944_s14 = sphi %s1985_s14, %s2330_s14   ;;  %s1940_s13 = sphi %s1983_s13, %s2329_s13   ;;  %s1936_s12 = sphi %s1981_s12, %s2328_s12  }
   0x7   : > { %p40_p0 = scmp.ne.s32.totalorder %s1940_s13, %s1936_s12  ;;  %p2312_p1 = scmp.eq.s32.totalorder %s2002_s16, 0 }
   0x8   : > { %p112_p3 = scmp.eq.s32.totalorder %s1086_s17, 1  ;;  %p1087_p5 = scmp.ge.s32.totalorder %s1948_s15, 1 }
   0x9   : > { %p2011_p4 = por %p2312_p1, %p40_p0  ;;  %p119_p7 = scmp.lt.s32.totalorder %s1948_s15, 3 }
   0xa   : > { %p2016_p6 = por %p112_p3, %p40_p0  ;;  %s1950_s21 = smov [#allocation5]  }
   0xb   : > { %s2315_s18 = scalar_select %p2011_p4, 1, 0 }
   0xc   : > { %s2316_s19 = scalar_select %p2016_p6, 1, 0 }
   0xd   : > { %p2021_p8 = pnand %p1087_p5, %p119_p7  ;;  %s131_s22 = sshll.u32 %s1950_s21, 4  ;;  %s2025_s22 = int_to_ptr.vmem [resolvable:$true] %s131_s22 }
   0xe   : > { %s1951_s24 = smov [#allocation7]   ;;  %s1792_s28 = scalar_lea.hbm %s2309_s1, 16384 }
   0xf   : > { %p1730_p9 = pneg %p2021_p8  ;;  %s144_s25 = sshll.u32 %s1951_s24, 4  ;;  %s2036_s25 = int_to_ptr.vmem [resolvable:$true] %s144_s25 }
  0x10   : > { %p1793_p12 = scmp.ne.s32.totalorder %s2309_s1, %s1792_s28  ;;  %p1799_p5 = scmp.lt.u32.totalorder %s1792_s28, %s2309_s1 }
  0x11   : > { %p2032_p11 = pnand %p1730_p9, %p2312_p1 }
  0x13   : > { %p1794_p13 = pneg %p2032_p11 }
  0x15   : > { %p1795_p0 = pnand %p1794_p13, %p1793_p12 }
  0x17   : > { %p1796_p3 = pneg %p1795_p0 }
  0x19   : > { %p1801_p7 = pnand %p1799_p5, %p1796_p3 }
  0x1b   : > { %1804 = shalt.err (!%p1801_p7)
}
  0x1c   : > { %s1805_s6 = scalar_lea.vmem %s2025_s22, 16384  ;;  %p1813_p2 = scmp.lt.s32.totalorder %s2025_s22, %s2025_s22 }
  0x1d   : > { %p1806_p9 = scmp.ne.s32.totalorder %s2025_s22, %s1805_s6  ;;  %p1814_p12 = scmp.lt.s32.totalorder %s1805_s6, %s1805_s6 }
  0x1f   : > { %p1808_p10 = pnand %p1806_p9, %p1794_p13  ;;  %p1815_p0 = por %p1814_p12, %p1813_p2 }
  0x21   : > { %p1809_p1 = pneg %p1808_p10 }
  0x23   : > { %p1816_p6 = pnand %p1815_p0, %p1809_p1 }
  0x25   : > { %1819 = shalt.err (!%p1816_p6)
}
  0x26   : > { %s1952_s7 = smov 128   ;;  %s1953_s8 = smov 8  }
  0x27   : > { %1733 = dma.hbm_to_vmem [thread:$0]  (!%p2032_p11), %s2309_s1, 16384, %s2025_s22, [#allocation6], %s1952_s7, %s1952_s7, %s1953_s8  }
  0x28   : > { %s1820_s21 = scalar_lea.hbm %s2310_s2, 128 }
  0x29   : > { %p1821_p2 = scmp.ne.s32.totalorder %s2310_s2, %s1820_s21  ;;  %p1827_p10 = scmp.lt.u32.totalorder %s1820_s21, %s2310_s2 }
  0x2b   : > { %p1823_p1 = pnand %p1821_p2, %p1794_p13 }
  0x2d   : > { %p1824_p6 = pneg %p1823_p1 }
  0x2f   : > { %p1829_p3 = pnand %p1827_p10, %p1824_p6 }
  0x31   : > { %1832 = shalt.err (!%p1829_p3)
}
  0x32   : > { %s1833_s22 = scalar_lea.vmem %s2036_s25, 128  ;;  %p1841_p12 = scmp.lt.s32.totalorder %s2036_s25, %s2036_s25 }
  0x33   : > { %p1834_p5 = scmp.ne.s32.totalorder %s2036_s25, %s1833_s22  ;;  %p1842_p0 = scmp.lt.s32.totalorder %s1833_s22, %s1833_s22 }
  0x35   : > { %p1836_p7 = pnand %p1834_p5, %p1794_p13  ;;  %p1843_p2 = por %p1842_p0, %p1841_p12 }
  0x37   : > { %p1837_p9 = pneg %p1836_p7 }
  0x39   : > { %p1844_p1 = pnand %p1843_p2, %p1837_p9 }
  0x3b   : > { %1847 = shalt.err (!%p1844_p1)
}
  0x3c   : > { %s1954_s29 = smov 16   ;;  %s1955_s30 = smov 1  }
  0x3d   : > { %1736 = dma.hbm_to_vmem [thread:$0]  (!%p2032_p11), %s2310_s2, 128, %s2036_s25, [#allocation6], %s1954_s29, %s1954_s29, %s1955_s30  }
  0x3e   : > { %s2091_s6 = sadd.s32 1, %s1948_s15   ;;  %s27_s8 = sadd.s32 1, %s1944_s14 }
  0x3f   : > { %s24_s7 = ssub.s32 %s1948_s15, %s2091_s6  ;;  %p34_p6 = scmp.ne.s32.totalorder %s1944_s14, %s1940_s13 }
  0x40   : > { %p25_p13 = scmp.eq.s32.totalorder %s24_s7, 0  ;;  %p35_p10 = scmp.eq.s32.totalorder %s1948_s15, 0 }
  0x41   : > { %p2319_p5 = scmp.eq.s32.totalorder %s2002_s16, 1  ;;  %p1747_p9 = scmp.lt.s32.totalorder %s1948_s15, 2 }
  0x42   : > { %s2100_s9 = scalar_select %p25_p13, %s1944_s14, %s27_s8  }
  0x43   : > { %p36_p3 = por %p35_p10, %p34_p6  ;;  %p2104_p7 = por %p2319_p5, %p34_p6 }
  0x44   : > { %s158_s23 = sand.u32 1, %s1944_s14   ;;  %s1092_s25 = sshll.u32 %s1948_s15, 7 }
  0x45   : > { %s2320_s10 = scalar_select %p2104_p7, 1, 0 }
  0x46   : > { %s1091_s11 = sshll.u32 %s158_s23, 3  ;;  %s2114_s24 = scalar_lea.hbm %s2308_s0, %s1092_s25 }
  0x47   : > { %s162_s26 = scalar_lea.vmem [#allocation2], %s1091_s11  ;;  %p2118_p11 = pnand %p1747_p9, %p36_p3 }
  0x48   : > { %s169_s27 = sshll.u32 %s162_s26, 4  ;;  %s159_s22 = scalar_lea.sflag [#allocation3], %s158_s23  ;;  %s2116_s27 = int_to_ptr.vmem [resolvable:$true] %s169_s27 }
  0x49   : > { %s1848_s29 = scalar_lea.hbm %s2114_s24, 128  ;;  %p1850_p0 = pneg %p2118_p11 }
  0x4a   : > { %p1849_p12 = scmp.ne.s32.totalorder %s2114_s24, %s1848_s29  ;;  %s1853_s5 = scalar_lea.hbm %s2308_s0, 256 }
  0x4b   : > { %p1854_p13 = scmp.lt.u32.totalorder %s2114_s24, %s2308_s0  ;;  %p1855_p6 = scmp.lt.u32.totalorder %s1853_s5, %s1848_s29 }
  0x4c   : > { %p1851_p2 = pnand %p1850_p0, %p1849_p12  ;;  %p1857_p3 = scmp.lt.u32.totalorder %s1848_s29, %s2114_s24 }
  0x4d   : > { %p1856_p10 = por %p1855_p6, %p1854_p13 }
  0x4e   : > { %p1852_p1 = pneg %p1851_p2 }
  0x4f   : > { %p1858_p5 = por %p1857_p3, %p1856_p10 }
  0x51   : > { %p1859_p9 = pnand %p1858_p5, %p1852_p1 }
  0x53   : > { %1862 = shalt.err (!%p1859_p9)
}
  0x54   : > { %s1863_s23 = scalar_lea.vmem %s2116_s27, 128  ;;  %s1956_s11 = smov [#allocation2]  }
  0x55   : > { %p1864_p12 = scmp.ne.s32.totalorder %s2116_s27, %s1863_s23  ;;  %s1868_s25 = sshll.u32 %s1956_s11, 4  ;;  %s1869_s25 = int_to_ptr.vmem [resolvable:$false] %s1868_s25 }
  0x56   : > { %s1870_s17 = scalar_lea.vmem %s1869_s25, 256  ;;  %p1871_p4 = scmp.lt.s32.totalorder %s2116_s27, %s1869_s25 }
  0x57   : > { %p1866_p2 = pnand %p1864_p12, %p1850_p0  ;;  %p1872_p13 = scmp.lt.s32.totalorder %s1870_s17, %s1863_s23 }
  0x59   : > { %p1867_p7 = pneg %p1866_p2  ;;  %p1873_p6 = por %p1872_p13, %p1871_p4 }
  0x5b   : > { %p1874_p10 = pnand %p1873_p6, %p1867_p7 }
  0x5d   : > { %1877 = shalt.err (!%p1874_p10)
}
  0x5e   : > { %1740 = dma.hbm_to_vmem [thread:$0]  (!%p2118_p11), %s2114_s24, 128, %s2116_s27, %s159_s22  }
  0x5f   : > { %178 = sbr.rel (%p2021_p8) target bundleno = 1882 (0x75a), region = 32  ;;  %s2150_s21 = sand.u32 (!%p2021_p8), 1, %s1940_s13  }
  0x60   : > { %s1094_s26 = sshll.u32 (!%p2021_p8), %s2150_s21, 3  ;;  %s181_s29 = scalar_lea.sflag (!%p2021_p8), [#allocation3], %s2150_s21 }
  0x61   : > { %s2156_s30 = scalar_lea.vmem (!%p2021_p8), [#allocation2], %s1094_s26  ;;  %p2322_p4 = scmp.ne.s32.totalorder (!%p2021_p8), %s2315_s18, 0 }
  0x66   : > { %1923 = dma.done.wait (%p2322_p4), %s181_s29, 128  }
  0x67   : > { %1925 = vsyncadd (%p2322_p4), %s181_s29, 4294967168  ;;  %p2323_p7 = scmp.eq.s32.totalorder %s2002_s16, 0 }
  0x69   : > { %1927 = dma.done.wait (%p2323_p7), [#allocation6], 16512   ;;  %p2324_p8 = pmov %p2323_p7 }
  0x6a   : > { %v1957_v0 = vmov 0.0|0.0   ;;  %vm1958_vm0 = vmmov 0   ;;  %v1959_v1 = vmov 0.0   ;;  %v216_v2 = vld [vmem:[#allocation5] sm:$0xff]  ;;  %v217_v3 = vld [vmem:[#allocation5 + $0x8] sm:$0xff]  ;;  %v218_v4 = vld [vmem:[#allocation5 + $0x10] sm:$0xff] }
  0x6b   : > { %1929 = vsyncadd (%p2324_p8), [#allocation6], 4294950784  ;;  %1526 = vmatprep.subr.bf16.mxu0 %v1957_v0  ;;  %1278 = vmatprep.mubr.msk.f32.mxu0 %vm1958_vm0, %v1959_v1  ;;  %v1527_v5 = vpack.c.bf16 %v217_v3, %v216_v2  ;;  %v219_v6 = vld [vmem:[#allocation5 + $0x18] sm:$0xff]  ;;  %v220_v8 = vld [vmem:[#allocation5 + $0x20] sm:$0xff]  ;;  %s1107_s18 = sshll.u32 %s2002_s16, 7  ;;  %s214_s20 = scalar_lea.vmem [#allocation8], %s1094_s26 }
  0x6c   : > { %1550 = vmatprep.subr.bf16.mxu1 %v1957_v0  ;;  %1313 = vmatprep.mubr.msk.f32.mxu1 %vm1958_vm0, %v1959_v1  ;;  %v1530_v7 = vpack.c.bf16 %v219_v6, %v218_v4  ;;  %v221_v9 = vld [vmem:[#allocation5 + $0x28] sm:$0xff]  ;;  %v311_v10 = vld [vmem:[#allocation5 + $0x80] sm:$0xff]  ;;  %v313_v12 = vld [vmem:[#allocation5 + $0x90] sm:$0xff]  ;;  %s997_s24 = sshll.u32 %s214_s20, 4  ;;  %s2264_s22 = scalar_lea.hbm %s2311_s3, %s1107_s18  ;;  %s2266_s24 = int_to_ptr.vmem [resolvable:$true] %s997_s24 }
  0x6d   : > { %1528 = vmatpush3.bf16.msra.mxu0 %v1527_v5  ;;  %v312_v11 = vld [vmem:[#allocation5 + $0x88] sm:$0xff]  ;;  %v314_v13 = vld [vmem:[#allocation5 + $0x98] sm:$0xff]  ;;  %v1533_v14 = vpack.c.bf16 %v221_v9, %v220_v8  ;;  %v222_v16 = vld [vmem:[#allocation5 + $0x30] sm:$0xff]  ;;  %s984_s4 = scalar_lea.sflag [#allocation4], %s2150_s21  ;;  %s1878_s16 = scalar_lea.vmem %s2266_s24, 128 }
  0x6e   : > { %1529 = vmatprep.subr.bf16.mxu0 %v1957_v0  ;;  %v1551_v15 = vpack.c.bf16 %v312_v11, %v311_v10  ;;  %v223_v17 = vld [vmem:[#allocation5 + $0x38] sm:$0xff]  ;;  %v1554_v18 = vpack.c.bf16 %v314_v13, %v313_v12  ;;  %v315_v19 = vld [vmem:[#allocation5 + $0xa0] sm:$0xff]  ;;  %v316_v20 = vld [vmem:[#allocation5 + $0xa8] sm:$0xff]  ;;  %p1879_p11 = scmp.ne.s32.totalorder %s2266_s24, %s1878_s16  ;;  %p2325_p0 = scmp.ne.s32.totalorder %s2320_s10, 0 }
  0x6f   : > { %v1536_v21 = vpack.c.bf16 %v223_v17, %v222_v16  ;;  %v224_v22 = vld [vmem:[#allocation5 + $0x40] sm:$0xff]  ;;  %v225_v23 = vld [vmem:[#allocation5 + $0x48] sm:$0xff]  ;;  %v1557_v24 = vpack.c.bf16 %v316_v20, %v315_v19  ;;  %v317_v25 = vld [vmem:[#allocation5 + $0xb0] sm:$0xff]  ;;  %s1960_s5 = smov [#allocation8]  }
  0x70   : > { %1552 = vmatpush3.bf16.msra.mxu1 %v1551_v15  ;;  %v318_v26 = vld [vmem:[#allocation5 + $0xb8] sm:$0xff]  ;;  %v1539_v27 = vpack.c.bf16 %v225_v23, %v224_v22  ;;  %v226_v28 = vld [vmem:[#allocation5 + $0x50] sm:$0xff]  ;;  %v319_v31 = vld [vmem:[#allocation5 + $0xc0] sm:$0xff]  ;;  %p1880_p1 = pnand %p1879_p11, %p2325_p0  ;;  %s1882_s7 = sshll.u32 %s1960_s5, 4  ;;  %s1883_s7 = int_to_ptr.vmem [resolvable:$false] %s1882_s7 }
  0x71   : > { %1531 = vmatpush3.bf16.msra.mxu0 %v1530_v7  ;;  %1553 = vmatprep.subr.bf16.mxu1 %v1957_v0  ;;  %v227_v29 = vld [vmem:[#allocation5 + $0x58] sm:$0xff]  ;;  %v1560_v30 = vpack.c.bf16 %v318_v26, %v317_v25  ;;  %v320_v32 = vld [vmem:[#allocation5 + $0xc8] sm:$0xff]  ;;  %v228_v34 = vld [vmem:[#allocation5 + $0x60] sm:$0xff]  ;;  %s1884_s8 = scalar_lea.vmem %s1883_s7, 256  ;;  %p1885_p5 = scmp.lt.s32.totalorder %s2266_s24, %s1883_s7 }
  0x72   : > { %1532 = vmatprep.subr.bf16.mxu0 %v1957_v0  ;;  %v1542_v33 = vpack.c.bf16 %v227_v29, %v226_v28  ;;  %v229_v35 = vld [vmem:[#allocation5 + $0x68] sm:$0xff]  ;;  %v1563_v36 = vpack.c.bf16 %v320_v32, %v319_v31  ;;  %v321_v37 = vld [vmem:[#allocation5 + $0xd0] sm:$0xff]  ;;  %v322_v38 = vld [vmem:[#allocation5 + $0xd8] sm:$0xff]  ;;  %p1881_p3 = pneg %p1880_p1  ;;  %p1886_p9 = scmp.lt.s32.totalorder %s1884_s8, %s1878_s16 }
  0x73   : > { %v1545_v39 = vpack.c.bf16 %v229_v35, %v228_v34  ;;  %v230_v40 = vld [vmem:[#allocation5 + $0x70] sm:$0xff]  ;;  %v231_v41 = vld [vmem:[#allocation5 + $0x78] sm:$0xff]  ;;  %v1566_v42 = vpack.c.bf16 %v322_v38, %v321_v37  ;;  %v323_v43 = vld [vmem:[#allocation5 + $0xe0] sm:$0xff] }
  0x74   : > { %1555 = vmatpush3.bf16.msra.mxu1 %v1554_v18  ;;  %v324_v44 = vld [vmem:[#allocation5 + $0xe8] sm:$0xff]  ;;  %v1548_v45 = vpack.c.bf16 %v231_v41, %v230_v40  ;;  %v2186_v47 = vld [vmem:[%s2156_s30] sm:$0xff]  ;;  %v407_v51 = vld [vmem:[#allocation5 + $0x100] sm:$0xff]  ;;  %p1887_p12 = por %p1886_p9, %p1885_p5 }
  0x75   : > { %1534 = vmatpush3.bf16.msra.mxu0 %v1533_v14  ;;  %1556 = vmatprep.subr.bf16.mxu1 %v1957_v0  ;;  %v1569_v46 = vpack.c.bf16 %v324_v44, %v323_v43  ;;  %v325_v48 = vld [vmem:[#allocation5 + $0xf0] sm:$0xff]  ;;  %v326_v49 = vld [vmem:[#allocation5 + $0xf8] sm:$0xff]  ;;  %v408_v52 = vld [vmem:[#allocation5 + $0x108] sm:$0xff] }
  0x76   : > { %1535 = vmatprep.subr.bf16.mxu0 %v1957_v0  ;;  %v1572_v50 = vpack.c.bf16 %v326_v49, %v325_v48  ;;  %v409_v53 = vld [vmem:[#allocation5 + $0x110] sm:$0xff]  ;;  %v1575_v54 = vpack.c.bf16 %v408_v52, %v407_v51  ;;  %v410_v55 = vld [vmem:[#allocation5 + $0x118] sm:$0xff]  ;;  %v411_v57 = vld [vmem:[#allocation5 + $0x120] sm:$0xff]  ;;  %p1888_p2 = pnand %p1887_p12, %p1881_p3 }
  0x77   : > { %v1578_v56 = vpack.c.bf16 %v410_v55, %v409_v53  ;;  %v412_v58 = vld [vmem:[#allocation5 + $0x128] sm:$0xff]  ;;  %v413_v60 = vld [vmem:[#allocation5 + $0x130] sm:$0xff]  ;;  %v414_v61 = vld [vmem:[#allocation5 + $0x138] sm:$0xff] }
  0x78   : > { %1558 = vmatpush3.bf16.msra.mxu1 %v1557_v24  ;;  %v1581_v59 = vpack.c.bf16 %v412_v58, %v411_v57  ;;  %v1584_v62 = vpack.c.bf16 %v414_v61, %v413_v60  ;;  %v415_v63 = vld [vmem:[#allocation5 + $0x140] sm:$0xff]  ;;  %v416_v2 = vld [vmem:[#allocation5 + $0x148] sm:$0xff]  ;;  %v417_v4 = vld [vmem:[#allocation5 + $0x150] sm:$0xff] }
  0x79   : > { %1537 = vmatpush3.bf16.msra.mxu0 %v1536_v21  ;;  %1559 = vmatprep.subr.bf16.mxu1 %v1957_v0  ;;  %v1587_v3 = vpack.c.bf16 %v416_v2, %v415_v63  ;;  %v418_v5 = vld [vmem:[#allocation5 + $0x158] sm:$0xff]  ;;  %v419_v7 = vld [vmem:[#allocation5 + $0x160] sm:$0xff]  ;;  %v420_v8 = vld [vmem:[#allocation5 + $0x168] sm:$0xff] }
  0x7a   : > { %1538 = vmatprep.subr.bf16.mxu0 %v1957_v0  ;;  %v1590_v6 = vpack.c.bf16 %v418_v5, %v417_v4  ;;  %v1593_v9 = vpack.c.bf16 %v420_v8, %v419_v7  ;;  %v1098_v10 = vld [vmem:[#allocation7] ss:$0 sm:$0xff]  ;;  %v421_v15 = vld [vmem:[#allocation5 + $0x170] sm:$0xff]  ;;  %v422_v16 = vld [vmem:[#allocation5 + $0x178] sm:$0xff] }
  0x7b   : > { %v1596_v17 = vpack.c.bf16 %v422_v16, %v421_v15  ;;  %v503_v18 = vld [vmem:[#allocation5 + $0x180] sm:$0xff]  ;;  %v504_v19 = vld [vmem:[#allocation5 + $0x188] sm:$0xff]  ;;  %v505_v20 = vld [vmem:[#allocation5 + $0x190] sm:$0xff] }
  0x7c   : > { %1561 = vmatpush3.bf16.msra.mxu1 %v1560_v30  ;;  %v1599_v21 = vpack.c.bf16 %v504_v19, %v503_v18  ;;  %v506_v22 = vld [vmem:[#allocation5 + $0x198] sm:$0xff]  ;;  %v507_v24 = vld [vmem:[#allocation5 + $0x1a0] sm:$0xff]  ;;  %v508_v25 = vld [vmem:[#allocation5 + $0x1a8] sm:$0xff] }
  0x7d   : > { %1540 = vmatpush3.bf16.msra.mxu0 %v1539_v27  ;;  %1562 = vmatprep.subr.bf16.mxu1 %v1957_v0  ;;  %v1602_v23 = vpack.c.bf16 %v506_v22, %v505_v20  ;;  %v1605_v26 = vpack.c.bf16 %v508_v25, %v507_v24  ;;  %v509_v27 = vld [vmem:[#allocation5 + $0x1b0] sm:$0xff]  ;;  %v510_v28 = vld [vmem:[#allocation5 + $0x1b8] sm:$0xff]  ;;  %v511_v30 = vld [vmem:[#allocation5 + $0x1c0] sm:$0xff] }
  0x7e   : > { %1541 = vmatprep.subr.bf16.mxu0 %v1957_v0  ;;  %v1608_v29 = vpack.c.bf16 %v510_v28, %v509_v27  ;;  %v512_v31 = vld [vmem:[#allocation5 + $0x1c8] sm:$0xff]  ;;  %v514_v34 = vld [vmem:[#allocation5 + $0x1d8] sm:$0xff]  ;;  %v517_v44 = vld [vmem:[#allocation5 + $0x1f0] sm:$0xff] }
  0x7f   : > { %v1611_v32 = vpack.c.bf16 %v512_v31, %v511_v30  ;;  %v516_v37 = vld [vmem:[#allocation5 + $0x1e8] sm:$0xff]  ;;  %v599_v48 = vld [vmem:[#allocation5 + $0x200] sm:$0xff]  ;;  %v602_v52 = vld [vmem:[#allocation5 + $0x218] sm:$0xff] }
  0x80   : > { %1564 = vmatpush3.bf16.msra.mxu1 %v1563_v36  ;;  %v515_v36 = vld [vmem:[#allocation5 + $0x1e0] sm:$0xff]  ;;  %v600_v49 = vld [vmem:[#allocation5 + $0x208] sm:$0xff]  ;;  %v605_v57 = vld [vmem:[#allocation5 + $0x230] sm:$0xff] }
  0x81   : > { %1543 = vmatpush3.bf16.msra.mxu0 %v1542_v33  ;;  %1565 = vmatprep.subr.bf16.mxu1 %v1957_v0  ;;  %v513_v33 = vld [vmem:[#allocation5 + $0x1d0] sm:$0xff]  ;;  %v1617_v38 = vpack.c.bf16 %v516_v37, %v515_v36  ;;  %v1623_v51 = vpack.c.bf16 %v600_v49, %v599_v48  ;;  %v604_v55 = vld [vmem:[#allocation5 + $0x228] sm:$0xff]  ;;  %v606_v58 = vld [vmem:[#allocation5 + $0x238] sm:$0xff] }
  0x82   : > { %1544 = vmatprep.subr.bf16.mxu0 %v1957_v0  ;;  %v1614_v35 = vpack.c.bf16 %v514_v34, %v513_v33  ;;  %v607_v60 = vld [vmem:[#allocation5 + $0x240] sm:$0xff]  ;;  %v608_v61 = vld [vmem:[#allocation5 + $0x248] sm:$0xff]  ;;  %v609_v63 = vld [vmem:[#allocation5 + $0x250] sm:$0xff] }
  0x83   : > { %v610_v2 = vld [vmem:[#allocation5 + $0x258] sm:$0xff]  ;;  %v611_v4 = vld [vmem:[#allocation5 + $0x260] sm:$0xff]  ;;  %v612_v5 = vld [vmem:[#allocation5 + $0x268] sm:$0xff] }
  0x84   : > { %1567 = vmatpush3.bf16.msra.mxu1 %v1566_v42  ;;  %v1100_v7 = vld [vmem:[#allocation7 + $0x2] ss:$0 sm:$0xff]  ;;  %v696_v16 = vld [vmem:[#allocation5 + $0x288] sm:$0xff]  ;;  %v698_v19 = vld [vmem:[#allocation5 + $0x298] sm:$0xff] }
  0x85   : > { %1546 = vmatpush3.bf16.msra.mxu0 %v1545_v39  ;;  %1568 = vmatprep.subr.bf16.mxu1 %v1957_v0  ;;  %v1099_v39 = vld [vmem:[#allocation7 + $0x1] ss:$0 sm:$0xff]  ;;  %v700_v22 = vld [vmem:[#allocation5 + $0x2a8] sm:$0xff]  ;;  %v701_v24 = vld [vmem:[#allocation5 + $0x2b0] sm:$0xff] }
  0x86   : > { %1547 = vmatprep.subr.bf16.mxu0 %v1957_v0  ;;  %v695_v15 = vld [vmem:[#allocation5 + $0x280] sm:$0xff]  ;;  %v702_v25 = vld [vmem:[#allocation5 + $0x2b8] sm:$0xff]  ;;  %v704_v28 = vld [vmem:[#allocation5 + $0x2c8] sm:$0xff] }
  0x87   : > { %v1647_v18 = vpack.c.bf16 %v696_v16, %v695_v15  ;;  %v703_v27 = vld [vmem:[#allocation5 + $0x2c0] sm:$0xff]  ;;  %v705_v30 = vld [vmem:[#allocation5 + $0x2d0] sm:$0xff]  ;;  %v706_v31 = vld [vmem:[#allocation5 + $0x2d8] sm:$0xff] }
  0x88   : > { %1570 = vmatpush3.bf16.msra.mxu1 %v1569_v46  ;;  %v707_v33 = vld [vmem:[#allocation5 + $0x2e0] sm:$0xff]  ;;  %v708_v34 = vld [vmem:[#allocation5 + $0x2e8] sm:$0xff]  ;;  %v794_v49 = vld [vmem:[#allocation5 + $0x318] sm:$0xff] }
  0x89   : > { %1549 = vmatpush3.bf16.msra.mxu0 %v1548_v45  ;;  %1571 = vmatprep.subr.bf16.mxu1 %v1957_v0  ;;  %v518_v45 = vld [vmem:[#allocation5 + $0x1f8] sm:$0xff]  ;;  %v1101_v36 = vld [vmem:[#allocation7 + $0x3] ss:$0 sm:$0xff] }
  0x8a   : > { %1574 = vmatprep.subr.bf16.mxu0 %v1957_v0  ;;  %v1620_v46 = vpack.c.bf16 %v518_v45, %v517_v44  ;;  %v791_v44 = vld [vmem:[#allocation5 + $0x300] sm:$0xff]  ;;  %v792_v45 = vld [vmem:[#allocation5 + $0x308] sm:$0xff]  ;;  %v890_v16 = vld [vmem:[#allocation5 + $0x398] sm:$0xff] }
  0x8b   : > { %v1671_v48 = vpack.c.bf16 %v792_v45, %v791_v44  ;;  %v1105_v44 = vld [vmem:[#allocation7 + $0x7] ss:$0 sm:$0xff] }
  0x8c   : > { %1279 = vmatmul.mubr.f32.vlgmr.msra.gmra.mrb[0].mxu0 %v2186_v47  ;;  %1573 = vmatpush3.bf16.msra.mxu1 %v1572_v50  ;;  %v601_v50 = vld [vmem:[#allocation5 + $0x210] sm:$0xff] }
  0x8d   : > { %1348 = vmatprep.mubr.msk.f32.mxu0 %vm1958_vm0, %v1959_v1  ;;  %1598 = vmatprep.subr.bf16.mxu1 %v1957_v0  ;;  %v1626_v53 = vpack.c.bf16 %v602_v52, %v601_v50  ;;  %v796_v52 = vld [vmem:[#allocation5 + $0x328] sm:$0xff] }
  0x8e   : > { %1576 = vmatpush3.bf16.msra.mxu0 %v1575_v54  ;;  %v603_v54 = vld [vmem:[#allocation5 + $0x220] sm:$0xff] }
  0x8f   : > { %1577 = vmatprep.subr.bf16.mxu0 %v1957_v0 }
  0x92   : > { %1579 = vmatpush3.bf16.msra.mxu0 %v1578_v56  ;;  %v1629_v56 = vpack.c.bf16 %v604_v55, %v603_v54  ;;  %v797_v54 = vld [vmem:[#allocation5 + $0x330] sm:$0xff]  ;;  %v798_v55 = vld [vmem:[#allocation5 + $0x338] sm:$0xff] }
  0x93   : > { %1580 = vmatprep.subr.bf16.mxu0 %v1957_v0 }
  0x96   : > { %1582 = vmatpush3.bf16.msra.mxu0 %v1581_v59  ;;  %v1632_v59 = vpack.c.bf16 %v606_v58, %v605_v57  ;;  %v799_v57 = vld [vmem:[#allocation5 + $0x340] sm:$0xff]  ;;  %v800_v58 = vld [vmem:[#allocation5 + $0x348] sm:$0xff] }
  0x97   : > { %1583 = vmatprep.subr.bf16.mxu0 %v1957_v0 }
  0x9a   : > { %1585 = vmatpush3.bf16.msra.mxu0 %v1584_v62  ;;  %v1635_v62 = vpack.c.bf16 %v608_v61, %v607_v60  ;;  %v801_v60 = vld [vmem:[#allocation5 + $0x350] sm:$0xff]  ;;  %v802_v61 = vld [vmem:[#allocation5 + $0x358] sm:$0xff] }
  0x9b   : > { %1586 = vmatprep.subr.bf16.mxu0 %v1957_v0 }
  0x9e   : > { %1588 = vmatpush3.bf16.msra.mxu0 %v1587_v3  ;;  %v1638_v3 = vpack.c.bf16 %v610_v2, %v609_v63  ;;  %v803_v63 = vld [vmem:[#allocation5 + $0x360] sm:$0xff]  ;;  %v804_v2 = vld [vmem:[#allocation5 + $0x368] sm:$0xff] }
  0x9f   : > { %1589 = vmatprep.subr.bf16.mxu0 %v1957_v0 }
  0xa2   : > { %1591 = vmatpush3.bf16.msra.mxu0 %v1590_v6  ;;  %v1641_v6 = vpack.c.bf16 %v612_v5, %v611_v4  ;;  %v1102_v4 = vld [vmem:[#allocation7 + $0x4] ss:$0 sm:$0xff] }
  0xa3   : > { %1592 = vmatprep.subr.bf16.mxu0 %v1957_v0 }
  0xa6   : > { %1594 = vmatpush3.bf16.msra.mxu0 %v1593_v9 }
  0xa7   : > { %1595 = vmatprep.subr.bf16.mxu0 %v1957_v0 }
  0xaa   : > { %1597 = vmatpush3.bf16.msra.mxu0 %v1596_v17  ;;  %v697_v17 = vld [vmem:[#allocation5 + $0x290] sm:$0xff] }
  0xab   : > { %1622 = vmatprep.subr.bf16.mxu0 %v1957_v0  ;;  %v1650_v20 = vpack.c.bf16 %v698_v19, %v697_v17  ;;  %v892_v19 = vld [vmem:[#allocation5 + $0x3a8] sm:$0xff] }
 0x15f   : > { %v305_v11 = vpop.f32.mrb[0].mxu0 }
 0x160   : > { %v306_v12 = vadd.f32 %v1098_v10, %v305_v11  ;;  %v1280_v13 = vpop.f32.mrb[1].mxu0 }
 0x161   : > { %v614_v13 = vld [vmem:[#allocation5 + $0x278] sm:$0xff] }
 0x162   : > { %v309_v14 = vadd.f32 %v306_v12, %v2186_v47  ;;  %v613_v12 = vld [vmem:[#allocation5 + $0x270] sm:$0xff] }
 0x164   : > { %1314 = vmatmul.mubr.f32.vlgmr.msra.gmra.mrb[0].mxu1 %v309_v14  ;;  %v1644_v14 = vpack.c.bf16 %v614_v13, %v613_v12  ;;  %v887_v12 = vld [vmem:[#allocation5 + $0x380] sm:$0xff]  ;;  %v888_v13 = vld [vmem:[#allocation5 + $0x388] sm:$0xff] }
 0x165   : > { %1383 = vmatprep.mubr.msk.f32.mxu1 %vm1958_vm0, %v1959_v1  ;;  %1600 = vmatpush3.bf16.msra.mxu1 %v1599_v21  ;;  %v699_v21 = vld [vmem:[#allocation5 + $0x2a0] sm:$0xff]  ;;  %v1695_v15 = vpack.c.bf16 %v888_v13, %v887_v12 }
 0x166   : > { %1601 = vmatprep.subr.bf16.mxu1 %v1957_v0 }
 0x169   : > { %1603 = vmatpush3.bf16.msra.mxu1 %v1602_v23  ;;  %v1653_v23 = vpack.c.bf16 %v700_v22, %v699_v21  ;;  %v894_v21 = vld [vmem:[#allocation5 + $0x3b8] sm:$0xff] }
 0x16a   : > { %1604 = vmatprep.subr.bf16.mxu1 %v1957_v0 }
 0x16d   : > { %1606 = vmatpush3.bf16.msra.mxu1 %v1605_v26  ;;  %v1656_v26 = vpack.c.bf16 %v702_v25, %v701_v24  ;;  %v896_v24 = vld [vmem:[#allocation5 + $0x3c8] sm:$0xff] }
 0x16e   : > { %1607 = vmatprep.subr.bf16.mxu1 %v1957_v0 }
 0x171   : > { %1609 = vmatpush3.bf16.msra.mxu1 %v1608_v29  ;;  %v1659_v29 = vpack.c.bf16 %v704_v28, %v703_v27  ;;  %v898_v27 = vld [vmem:[#allocation5 + $0x3d8] sm:$0xff] }
 0x172   : > { %1610 = vmatprep.subr.bf16.mxu1 %v1957_v0 }
 0x175   : > { %1612 = vmatpush3.bf16.msra.mxu1 %v1611_v32  ;;  %v1662_v32 = vpack.c.bf16 %v706_v31, %v705_v30  ;;  %v900_v30 = vld [vmem:[#allocation5 + $0x3e8] sm:$0xff] }
 0x176   : > { %1613 = vmatprep.subr.bf16.mxu1 %v1957_v0 }
 0x179   : > { %1615 = vmatpush3.bf16.msra.mxu1 %v1614_v35  ;;  %v1665_v35 = vpack.c.bf16 %v708_v34, %v707_v33 }
 0x17a   : > { %1616 = vmatprep.subr.bf16.mxu1 %v1957_v0 }
 0x17d   : > { %1618 = vmatpush3.bf16.msra.mxu1 %v1617_v38 }
 0x17e   : > { %1619 = vmatprep.subr.bf16.mxu1 %v1957_v0 }
 0x181   : > { %1621 = vmatpush3.bf16.msra.mxu1 %v1620_v46  ;;  %v793_v46 = vld [vmem:[#allocation5 + $0x310] sm:$0xff] }
 0x182   : > { %1646 = vmatprep.subr.bf16.mxu1 %v1957_v0  ;;  %v1674_v50 = vpack.c.bf16 %v794_v49, %v793_v46 }
 0x237   : > { %v401_v40 = vpop.f32.mrb[0].mxu1 }
 0x238   : > { %v402_v41 = vadd.f32 %v1099_v39, %v401_v40  ;;  %v1315_v42 = vpop.f32.mrb[1].mxu1 }
 0x239   : > { %v710_v42 = vld [vmem:[#allocation5 + $0x2f8] sm:$0xff] }
 0x23a   : > { %v405_v43 = vadd.f32 %v402_v41, %v2186_v47  ;;  %v709_v41 = vld [vmem:[#allocation5 + $0x2f0] sm:$0xff] }
 0x23c   : > { %1349 = vmatmul.mubr.f32.vlgmr.msra.gmra.mrb[2].mxu0 %v405_v43  ;;  %v1668_v43 = vpack.c.bf16 %v710_v42, %v709_v41 }
 0x23d   : > { %1418 = vmatprep.mubr.msk.f32.mxu0 %vm1958_vm0, %v1959_v1  ;;  %1624 = vmatpush3.bf16.msra.mxu0 %v1623_v51  ;;  %v795_v51 = vld [vmem:[#allocation5 + $0x320] sm:$0xff] }
 0x23e   : > { %1625 = vmatprep.subr.bf16.mxu0 %v1957_v0 }
 0x241   : > { %1627 = vmatpush3.bf16.msra.mxu0 %v1626_v53  ;;  %v1677_v53 = vpack.c.bf16 %v796_v52, %v795_v51 }
 0x242   : > { %1628 = vmatprep.subr.bf16.mxu0 %v1957_v0 }
 0x245   : > { %1630 = vmatpush3.bf16.msra.mxu0 %v1629_v56  ;;  %v1680_v56 = vpack.c.bf16 %v798_v55, %v797_v54 }
 0x246   : > { %1631 = vmatprep.subr.bf16.mxu0 %v1957_v0 }
 0x249   : > { %1633 = vmatpush3.bf16.msra.mxu0 %v1632_v59  ;;  %v1683_v59 = vpack.c.bf16 %v800_v58, %v799_v57 }
 0x24a   : > { %1634 = vmatprep.subr.bf16.mxu0 %v1957_v0 }
 0x24d   : > { %1636 = vmatpush3.bf16.msra.mxu0 %v1635_v62  ;;  %v1686_v62 = vpack.c.bf16 %v802_v61, %v801_v60 }
 0x24e   : > { %1637 = vmatprep.subr.bf16.mxu0 %v1957_v0 }
 0x251   : > { %1639 = vmatpush3.bf16.msra.mxu0 %v1638_v3  ;;  %v1689_v3 = vpack.c.bf16 %v804_v2, %v803_v63 }
 0x252   : > { %1640 = vmatprep.subr.bf16.mxu0 %v1957_v0 }
 0x255   : > { %1642 = vmatpush3.bf16.msra.mxu0 %v1641_v6 }
 0x256   : > { %1643 = vmatprep.subr.bf16.mxu0 %v1957_v0 }
 0x259   : > { %1645 = vmatpush3.bf16.msra.mxu0 %v1644_v14  ;;  %v889_v14 = vld [vmem:[#allocation5 + $0x390] sm:$0xff] }
 0x25a   : > { %1670 = vmatprep.subr.bf16.mxu0 %v1957_v0  ;;  %v1698_v17 = vpack.c.bf16 %v890_v16, %v889_v14 }
 0x30f   : > { %v497_v8 = vpop.f32.mrb[2].mxu0 }
 0x310   : > { %v498_v9 = vadd.f32 %v1100_v7, %v497_v8  ;;  %v1350_v10 = vpop.f32.mrb[3].mxu0 }
 0x311   : > { %v806_v10 = vld [vmem:[#allocation5 + $0x378] sm:$0xff] }
 0x312   : > { %v501_v11 = vadd.f32 %v498_v9, %v2186_v47  ;;  %v805_v9 = vld [vmem:[#allocation5 + $0x370] sm:$0xff] }
 0x314   : > { %1384 = vmatmul.mubr.f32.vlgmr.msra.gmra.mrb[2].mxu1 %v501_v11  ;;  %v1692_v11 = vpack.c.bf16 %v806_v10, %v805_v9 }
 0x315   : > { %1453 = vmatprep.mubr.msk.f32.mxu1 %vm1958_vm0, %v1959_v1  ;;  %1648 = vmatpush3.bf16.msra.mxu1 %v1647_v18  ;;  %v891_v18 = vld [vmem:[#allocation5 + $0x3a0] sm:$0xff] }
 0x316   : > { %1649 = vmatprep.subr.bf16.mxu1 %v1957_v0 }
 0x319   : > { %1651 = vmatpush3.bf16.msra.mxu1 %v1650_v20  ;;  %v1701_v20 = vpack.c.bf16 %v892_v19, %v891_v18 }
 0x31a   : > { %1652 = vmatprep.subr.bf16.mxu1 %v1957_v0 }
 0x31d   : > { %1654 = vmatpush3.bf16.msra.mxu1 %v1653_v23  ;;  %v895_v23 = vld [vmem:[#allocation5 + $0x3c0] sm:$0xff] }
 0x31e   : > { %1655 = vmatprep.subr.bf16.mxu1 %v1957_v0  ;;  %v1707_v25 = vpack.c.bf16 %v896_v24, %v895_v23 }
 0x321   : > { %1657 = vmatpush3.bf16.msra.mxu1 %v1656_v26  ;;  %v897_v26 = vld [vmem:[#allocation5 + $0x3d0] sm:$0xff] }
 0x322   : > { %1658 = vmatprep.subr.bf16.mxu1 %v1957_v0  ;;  %v1710_v28 = vpack.c.bf16 %v898_v27, %v897_v26 }
 0x325   : > { %1660 = vmatpush3.bf16.msra.mxu1 %v1659_v29  ;;  %v899_v29 = vld [vmem:[#allocation5 + $0x3e0] sm:$0xff] }
 0x326   : > { %1661 = vmatprep.subr.bf16.mxu1 %v1957_v0  ;;  %v1713_v31 = vpack.c.bf16 %v900_v30, %v899_v29 }
 0x329   : > { %1663 = vmatpush3.bf16.msra.mxu1 %v1662_v32  ;;  %v1103_v32 = vld [vmem:[#allocation7 + $0x5] ss:$0 sm:$0xff] }
 0x32a   : > { %1664 = vmatprep.subr.bf16.mxu1 %v1957_v0 }
 0x32d   : > { %1666 = vmatpush3.bf16.msra.mxu1 %v1665_v35 }
 0x32e   : > { %1667 = vmatprep.subr.bf16.mxu1 %v1957_v0 }
 0x331   : > { %1669 = vmatpush3.bf16.msra.mxu1 %v1668_v43 }
 0x332   : > { %1694 = vmatprep.subr.bf16.mxu1 %v1957_v0 }
 0x3e7   : > { %v593_v37 = vpop.f32.mrb[2].mxu1 }
 0x3e8   : > { %v594_v38 = vadd.f32 %v1101_v36, %v593_v37  ;;  %v1385_v39 = vpop.f32.mrb[3].mxu1  ;;  %v901_v37 = vld [vmem:[#allocation5 + $0x3f0] sm:$0xff] }
 0x3ea   : > { %v597_v40 = vadd.f32 %v594_v38, %v2186_v47  ;;  %v902_v38 = vld [vmem:[#allocation5 + $0x3f8] sm:$0xff] }
 0x3eb   : > { %v1716_v39 = vpack.c.bf16 %v902_v38, %v901_v37 }
 0x3ec   : > { %1419 = vmatmul.mubr.f32.vlgmr.msra.gmra.mrb[4].mxu0 %v597_v40  ;;  %v1104_v40 = vld [vmem:[#allocation7 + $0x6] ss:$0 sm:$0xff] }
 0x3ed   : > { %1488 = vmatprep.mubr.msk.f32.mxu0 %vm1958_vm0, %v1959_v1  ;;  %1672 = vmatpush3.bf16.msra.mxu0 %v1671_v48 }
 0x3ee   : > { %1673 = vmatprep.subr.bf16.mxu0 %v1957_v0 }
 0x3f1   : > { %1675 = vmatpush3.bf16.msra.mxu0 %v1674_v50 }
 0x3f2   : > { %1676 = vmatprep.subr.bf16.mxu0 %v1957_v0 }
 0x3f5   : > { %1678 = vmatpush3.bf16.msra.mxu0 %v1677_v53 }
 0x3f6   : > { %1679 = vmatprep.subr.bf16.mxu0 %v1957_v0 }
 0x3f9   : > { %1681 = vmatpush3.bf16.msra.mxu0 %v1680_v56 }
 0x3fa   : > { %1682 = vmatprep.subr.bf16.mxu0 %v1957_v0 }
 0x3fd   : > { %1684 = vmatpush3.bf16.msra.mxu0 %v1683_v59 }
 0x3fe   : > { %1685 = vmatprep.subr.bf16.mxu0 %v1957_v0 }
 0x401   : > { %1687 = vmatpush3.bf16.msra.mxu0 %v1686_v62 }
 0x402   : > { %1688 = vmatprep.subr.bf16.mxu0 %v1957_v0 }
 0x405   : > { %1690 = vmatpush3.bf16.msra.mxu0 %v1689_v3 }
 0x406   : > { %1691 = vmatprep.subr.bf16.mxu0 %v1957_v0 }
 0x409   : > { %1693 = vmatpush3.bf16.msra.mxu0 %v1692_v11 }
 0x4bf   : > { %v689_v5 = vpop.f32.mrb[4].mxu0 }
 0x4c0   : > { %v690_v6 = vadd.f32 %v1102_v4, %v689_v5  ;;  %v1420_v7 = vpop.f32.mrb[5].mxu0 }
 0x4c2   : > { %v693_v8 = vadd.f32 %v690_v6, %v2186_v47 }
 0x4c4   : > { %1454 = vmatmul.mubr.f32.vlgmr.msra.gmra.mrb[4].mxu1 %v693_v8 }
 0x4c5   : > { %1523 = vmatprep.mubr.msk.f32.mxu1 %vm1958_vm0, %v1959_v1  ;;  %1696 = vmatpush3.bf16.msra.mxu1 %v1695_v15  ;;  %v893_v1 = vld [vmem:[#allocation5 + $0x3b0] sm:$0xff] }
 0x4c6   : > { %1697 = vmatprep.subr.bf16.mxu1 %v1957_v0  ;;  %v1704_v22 = vpack.c.bf16 %v894_v21, %v893_v1 }
 0x4c9   : > { %1699 = vmatpush3.bf16.msra.mxu1 %v1698_v17 }
 0x4ca   : > { %1700 = vmatprep.subr.bf16.mxu1 %v1957_v0 }
 0x4cd   : > { %1702 = vmatpush3.bf16.msra.mxu1 %v1701_v20 }
 0x4ce   : > { %1703 = vmatprep.subr.bf16.mxu1 %v1957_v0 }
 0x4d1   : > { %1705 = vmatpush3.bf16.msra.mxu1 %v1704_v22 }
 0x4d2   : > { %1706 = vmatprep.subr.bf16.mxu1 %v1957_v0 }
 0x4d5   : > { %1708 = vmatpush3.bf16.msra.mxu1 %v1707_v25 }
 0x4d6   : > { %1709 = vmatprep.subr.bf16.mxu1 %v1957_v0 }
 0x4d9   : > { %1711 = vmatpush3.bf16.msra.mxu1 %v1710_v28 }
 0x4da   : > { %1712 = vmatprep.subr.bf16.mxu1 %v1957_v0 }
 0x4dd   : > { %1714 = vmatpush3.bf16.msra.mxu1 %v1713_v31 }
 0x4de   : > { %1715 = vmatprep.subr.bf16.mxu1 %v1957_v0 }
 0x4e1   : > { %1717 = vmatpush3.bf16.msra.mxu1 %v1716_v39 }
 0x597   : > { %v785_v33 = vpop.f32.mrb[4].mxu1 }
 0x598   : > { %v786_v34 = vadd.f32 %v1103_v32, %v785_v33  ;;  %v1455_v35 = vpop.f32.mrb[5].mxu1 }
 0x59a   : > { %v789_v36 = vadd.f32 %v786_v34, %v2186_v47 }
 0x59c   : > { %1489 = vmatmul.mubr.f32.vlgmr.msra.gmra.mrb[6].mxu0 %v789_v36 }
 0x66f   : > { %v881_v41 = vpop.f32.mrb[6].mxu0 }
 0x670   : > { %v882_v42 = vadd.f32 %v1104_v40, %v881_v41  ;;  %v1490_v43 = vpop.f32.mrb[7].mxu0 }
 0x672   : > { %v885_v0 = vadd.f32 %v882_v42, %v2186_v47 }
 0x674   : > { %1524 = vmatmul.mubr.f32.vlgmr.msra.gmra.mrb[6].mxu1 %v885_v0 }
 0x747   : > { %v977_v45 = vpop.f32.mrb[6].mxu1 }
 0x748   : > { %v978_v46 = vadd.f32 %v1105_v44, %v977_v45  ;;  %v1525_v48 = vpop.f32.mrb[7].mxu1 }
 0x74a   : > { %v981_v49 = vadd.f32 %v978_v46, %v2186_v47 }
 0x74c   : > { %982 = vst [vmem:[%s214_s20] sm:$0xff] %v981_v49 }
 0x74d   : > { %1891 = shalt.err (!%p1888_p2)
}
 0x74e   : > { %s1892_s23 = scalar_lea.hbm %s2264_s22, 128  ;;  %s1896_s17 = scalar_lea.hbm %s2311_s3, 256 }
 0x74f   : > { %p1893_p13 = scmp.ne.s32.totalorder %s2264_s22, %s1892_s23  ;;  %p1897_p4 = scmp.lt.u32.totalorder %s2264_s22, %s2311_s3 }
 0x750   : > { %p1898_p7 = scmp.lt.u32.totalorder %s1896_s17, %s1892_s23  ;;  %p1900_p11 = scmp.lt.u32.totalorder %s1892_s23, %s2264_s22 }
 0x751   : > { %p1894_p6 = pnand %p1893_p13, %p2325_p0 }
 0x752   : > { %p1899_p8 = por %p1898_p7, %p1897_p4 }
 0x753   : > { %p1895_p10 = pneg %p1894_p6 }
 0x754   : > { %p1901_p1 = por %p1900_p11, %p1899_p8 }
 0x756   : > { %p1902_p3 = pnand %p1901_p1, %p1895_p10 }
 0x758   : > { %1905 = shalt.err (!%p1902_p3)
}
 0x759   : > { %1728 = dma.vmem_to_hbm [thread:$0]  (%p2325_p0), %s2266_s24, 128, %s2264_s22, %s984_s4  }
 0x75a PF: > { %s1009_s29 = sand.u32 1, %s1936_s12   ;;  %p2326_p5 = scmp.ne.s32.totalorder %s2316_s19, 0 }
 0x75b   : > { %p2327_p9 = scmp.ge.s32.totalorder %s1948_s15, 2  ;;  %s1010_s30 = scalar_lea.sflag [#allocation4], %s1009_s29 }
 0x75d   : > { %p1742_p12 = pnand %p2327_p9, %p2326_p5 }
 0x75f   : > { %1931 = dma.done.wait (!%p1742_p12), %s1010_s30, 128  }
 0x760   : > { %1933 = vsyncadd (!%p1742_p12), %s1010_s30, 4294967168  ;;  %p17_p2 = scmp.ge.s32.totalorder %s2091_s6, 4   ;;  %s2328_s12 = smov %s1940_s13 }
 0x761   : > { %s2329_s13 = smov %s1944_s14  ;;  %s2330_s14 = smov %s2100_s9 }
 0x762   : > { %s2331_s15 = smov %s2091_s6  ;;  %19 = sbr.rel (!%p17_p2) target bundleno = 6 (0x6), region = 99 }
 0x769   :  { %1015 = vsyncpa [#allocation3], 1 }
 0x76a   :  { %1017 = vsyncpa [#allocation3 + $0x1], 1 }
 0x76b   :  { %1018 = vsyncpa [#allocation6], 1 }
 0x76c   :  { %1019 = vsyncpa [#allocation4], 1 }
 0x76d   :  { %1021 = vsyncpa [#allocation4 + $0x1], 1 }

</bundles_post_ra>
